<compile_context>
chip_gen: v7x
topology: tpu7x:2x2x1
jax: 0.10.0
libtpu: 0.0.40
codegen_flags: <defaults>
</compile_context>

<pallas_src>
import math
import functools

import jax
import jax.numpy as jnp
import numpy as np
from jax.experimental import pallas as pl
from jax.experimental.pallas import tpu as pltpu

_EPS_NORM = 1e-15      # geoopt clamp_min on norms / denominators
_EPS_ATANH = 1e-7      # artanh input clamp
_EPS_PROJ = 4e-3       # geoopt projx epsilon for float32
_LANE = 128


# ----------------------------- pure-JAX math helpers (wrapper + reference) ---

def _artanh(x):
    x = jnp.clip(x, -1.0 + _EPS_ATANH, 1.0 - _EPS_ATANH)
    return 0.5 * jnp.log((1.0 + x) / (1.0 - x))


def _row_norm(x):
    return jnp.maximum(jnp.sqrt(jnp.sum(x * x, axis=-1, keepdims=True)), _EPS_NORM)


def _projx(x, c):
    norm = _row_norm(x)
    maxnorm = (1.0 - _EPS_PROJ) / jnp.sqrt(c)
    projected = x / norm * maxnorm
    return jnp.where(norm > maxnorm, projected, x)


def _expmap0(u, c):
    sqrt_c = jnp.sqrt(c)
    u_norm = _row_norm(u)
    return jnp.tanh(sqrt_c * u_norm) * u / (sqrt_c * u_norm)


def _mobius_add(x, y, c):
    x2 = jnp.sum(x * x, axis=-1, keepdims=True)
    y2 = jnp.sum(y * y, axis=-1, keepdims=True)
    xy = jnp.sum(x * y, axis=-1, keepdims=True)
    num = (1.0 + 2.0 * c * xy + c * y2) * x + (1.0 - c * x2) * y
    denom = 1.0 + 2.0 * c * xy + c * c * x2 * y2
    return num / jnp.maximum(denom, _EPS_NORM)


def _round_up(n, m):
    return (n + m - 1) // m * m


# ----------------------------- in-kernel helpers ------------------------------

def _recip(x):
    # EUP approximate reciprocal + one Newton-Raphson refinement step.
    # All call sites are (tm, 1) column vectors, so the refinement is cheap.
    r = pl.reciprocal(x, approx=True)
    return r * (2.0 - x * r)


def _artanh_k(x):
    x = jnp.clip(x, -1.0 + _EPS_ATANH, 1.0 - _EPS_ATANH)
    return 0.5 * jnp.log((1.0 + x) / (1.0 - x))


# ----------------------------- Pallas kernel ----------------------------------

def _mobius_linear_kernel(x_ref, wt_ref, whb_ref, hb_ref, hbsq_ref, o_ref, *, c):
    x = x_ref[...].astype(jnp.float32)       # (tm, Dk)  f32 (epilogue math stays f32)
    hb = hb_ref[...]                         # (1, Dn)   precomputed projx(expmap0(bias))
    y2 = hbsq_ref[...]                       # (1, 1)    sum(hb*hb)

    c = jnp.float32(c)
    sqrt_c = jnp.sqrt(c)
    maxnorm = (1.0 - _EPS_PROJ) / sqrt_c

    # --- mobius_matvec(W, x): one MXU matmul, per-row (tm,1) coefficients ---
    x_sq = jnp.sum(x * x, axis=-1, keepdims=True)                 # (tm,1)  (XLU #1)
    x_norm = jnp.maximum(jnp.sqrt(x_sq), _EPS_NORM)

    mx = jnp.dot(x.astype(wt_ref.dtype), wt_ref[...],
                 preferred_element_type=jnp.float32)              # (tm, Dn) on MXU
    # Raw <mx, hb> via the MXU (w_hb = W^T @ hb precomputed, column 0 of whb_ref).
    mhb = jnp.dot(x, whb_ref[...],
                  preferred_element_type=jnp.float32)[:, :1]      # (tm, 1)

    mx_sq = jnp.sum(mx * mx, axis=-1, keepdims=True)              # (tm,1)  (XLU #2)
    mx_norm = jnp.maximum(jnp.sqrt(mx_sq), _EPS_NORM)

    ratio = mx_norm * _recip(x_norm)
    coef = jnp.tanh(ratio * _artanh_k(sqrt_c * x_norm)) * _recip(mx_norm * sqrt_c)
    coef = jnp.where(mx_sq > 0.0, coef, 0.0)     # all-zero-row guard (mx == 0)

    # --- projx(mv) folded into a single per-row scale a:  res = a * mx ---
    mv_sq = coef * coef * mx_sq
    mv_norm = jnp.maximum(jnp.sqrt(mv_sq), _EPS_NORM)
    s1 = jnp.where(mv_norm > maxnorm, maxnorm * _recip(mv_norm), 1.0)
    a = coef * s1                                                  # (tm,1)
    res_sq = a * a * mx_sq                                         # x2 of mobius_add

    # --- mobius_add(res, hyp_bias) with hoisted bias constants ---
    two_c_xy = 2.0 * c * a * mhb                                   # (tm,1)
    g = 1.0 + two_c_xy + c * y2                                    # (tm,1)
    denom = 1.0 + two_c_xy + c * c * res_sq * y2                   # (tm,1)
    inv_denom = _recip(jnp.maximum(denom, _EPS_NORM))
    ga = g * a * inv_denom                                         # coeff on mx
    gb = (1.0 - c * res_sq) * inv_denom                            # coeff on hb

    # --- final projx, analytic norm (r never materialized) ---
    #   r = ga*mx + gb*hb  =>  |r|^2 = ga^2*mx_sq + 2*ga*gb*<mx,hb> + gb^2*|hb|^2
    r_sq = jnp.maximum(ga * ga * mx_sq + 2.0 * ga * gb * mhb + gb * gb * y2, 0.0)
    r_norm = jnp.maximum(jnp.sqrt(r_sq), _EPS_NORM)
    s2 = jnp.where(r_norm > maxnorm, maxnorm * _recip(r_norm), 1.0)
    o_ref[...] = ((ga * s2) * mx + (gb * s2) * hb).astype(o_ref.dtype)


# ----------------------------- wrappers ----------------------------------------

def prepare_mobius_params(weight, bias, *, c=1.0, matmul_dtype=jnp.bfloat16):
    """One-time parameter prep (cache outside the hot path).

    Returns (wt, w_hb, hyp_bias, hyp_bias_sq):
      wt          : (Din_p, Dout_p)  W^T, zero-padded to 128 multiples, bf16 by
                    default (full MXU rate, half the VMEM/DMA); pass
                    matmul_dtype=jnp.float32 for the validated exact path.
      w_hb        : (Din_p, 128)     column 0 = W^T @ hyp_bias (f32), rest zero.
      hyp_bias    : (1, Dout_p)      projx(expmap0(bias)), f32, zero-padded.
      hyp_bias_sq : (1, 1)           sum(hyp_bias**2), f32.
    """
    out_f, in_f = weight.shape
    din_p = _round_up(in_f, _LANE)
    dout_p = _round_up(out_f, _LANE)

    wt_f32 = jnp.zeros((din_p, dout_p), jnp.float32)
    wt_f32 = wt_f32.at[:in_f, :out_f].set(weight.T.astype(jnp.float32))
    wt = wt_f32.astype(matmul_dtype)

    hb = _projx(_expmap0(bias.reshape(1, -1).astype(jnp.float32), c), c)
    hb_p = jnp.zeros((1, dout_p), jnp.float32).at[:, :out_f].set(hb)
    hb_sq = jnp.sum(hb_p * hb_p, axis=-1, keepdims=True)

    w_hb = wt_f32 @ hb_p.T                                         # (Din_p, 1), exact f32
    w_hb_p = jnp.zeros((din_p, _LANE), jnp.float32).at[:, :1].set(w_hb)
    return wt, w_hb_p, hb_p, hb_sq


def _vmem_budget_bytes():
    """Generation-aware VMEM budget: physical capacity minus compiler headroom."""
    try:
        cap = int(pltpu.get_tpu_info().vmem_capacity_bytes)
    except Exception:
        cap = 64 * 1024 * 1024          # conservative (v7x-sized) fallback
    return cap - max(8 * 1024 * 1024, cap // 8)   # ~56 MiB on v7x, ~112 MiB on v5e/v6e


def _choose_tm(n_rows, target):
    """Largest 8-aligned row tile up to `target` (128-multiples preferred).

    No artificial halving: on single-TC parts (v5e/v6e) splitting a fitting tile
    only adds per-step overhead; on v7x, realistic N >> target already gives
    many grid steps per TensorCore.
    """
    target = max(8, (int(target) // 8) * 8)
    if n_rows <= target:
        return max(8, _round_up(n_rows, 8))
    return target


def mobius_linear(x, wt, w_hb, hyp_bias, hyp_bias_sq, *, c=1.0,
                  out_features=None, tm=256, out_dtype=jnp.float32):
    """x: (N, Din); wt/w_hb/hyp_bias/hyp_bias_sq from prepare_mobius_params."""
    N, din = x.shape
    din_p, dout_p = wt.shape
    out_features = dout_p if out_features is None else out_features

    w_itemsize = jnp.dtype(wt.dtype).itemsize
    o_itemsize = jnp.dtype(out_dtype).itemsize
    weight_bytes = din_p * dout_p * w_itemsize
    # Constant index_map -> Pallas never re-DMAs the weight, but still allocates
    # two buffers by default; request single buffering when the weight is big.
    single_buffer_w = weight_bytes >= (4 * 1024 * 1024)
    w_bufs = 1 if single_buffer_w else 2

    budget = _vmem_budget_bytes()
    tm_eff = _choose_tm(N, tm)

    def est_vmem(tm_):
        return (2 * tm_ * din_p * 4                 # x tiles (double-buffered)
                + w_bufs * din_p * dout_p * w_itemsize
                + 2 * din_p * _LANE * 4             # w_hb
                + 2 * tm_ * dout_p * o_itemsize     # output tiles
                + 4 * tm_ * dout_p * 4              # in-kernel temporaries (mx, o, ...)
                + 8 * dout_p * 4)

    while est_vmem(tm_eff) > budget and tm_eff > 128:
        tm_eff = max(128, _round_up(tm_eff // 2, 8))
    # TODO(synk): if the (single-buffered) weight alone exceeds ~1/3 of the VMEM
    # budget (large Din*Dout on v7x's 64 MiB), add a K (Din) grid axis marked
    # "arbitrary" with a (tm, Dout_p) f32 accumulator and run the epilogue at
    # k == last, streaming W from HBM instead of holding it resident.

    n_p = _round_up(N, tm_eff)

    # Pad x only if needed (row and/or lane padding); avoid a copy otherwise.
    # TODO(synk): for 128-multiple Din, a scalar-prefetched true-N + in-kernel
    # mask of the ragged last tile would avoid even the row-pad copy.
    if (n_p, din_p) != (N, din) or x.dtype != jnp.float32:
        x_p = jnp.pad(x.astype(jnp.float32), ((0, n_p - N), (0, din_p - din)))
    else:
        x_p = x

    vmem_limit = int(min(max(2 * est_vmem(tm_eff), 32 * 1024 * 1024), budget))

    if single_buffer_w:
        w_spec = pl.BlockSpec((din_p, dout_p), lambda i: (0, 0),
                              pipeline_mode=pl.Buffered(1))
    else:
        w_spec = pl.BlockSpec((din_p, dout_p), lambda i: (0, 0))

    kernel = functools.partial(_mobius_linear_kernel, c=float(c))

    out = pl.pallas_call(
        kernel,
        out_shape=jax.ShapeDtypeStruct((n_p, dout_p), out_dtype),
        grid_spec=pltpu.PrefetchScalarGridSpec(
            num_scalar_prefetch=0,
            grid=(n_p // tm_eff,),
            in_specs=[
                pl.BlockSpec((tm_eff, din_p), lambda i: (i, 0)),   # x row-tile
                w_spec,                                            # full W^T (constant)
                pl.BlockSpec((din_p, _LANE), lambda i: (0, 0)),    # W^T @ hb
                pl.BlockSpec((1, dout_p), lambda i: (0, 0)),       # hyp_bias
                pl.BlockSpec((1, 1), lambda i: (0, 0)),            # sum(hb^2)
            ],
            out_specs=pl.BlockSpec((tm_eff, dout_p), lambda i: (i, 0)),
        ),
        compiler_params=pltpu.CompilerParams(
            dimension_semantics=("parallel",),
            vmem_limit_bytes=vmem_limit,
        ),
    )(x_p, wt, w_hb, hyp_bias, hyp_bias_sq)

    if n_p == N and dout_p == out_features:
        return out
    return out[:N, :out_features]


# ----------------------------- pure-JAX reference (for sanity) ----------------

def _reference(x, weight, bias, c=1.0):
    sqrt_c = jnp.sqrt(jnp.float32(c))
    x_norm = _row_norm(x)
    mx = x @ weight.T
    mx_norm = _row_norm(mx)
    res_c = jnp.tanh(mx_norm / x_norm * _artanh(sqrt_c * x_norm)) * mx / (mx_norm * sqrt_c)
    mv = jnp.where(jnp.all(mx == 0.0, axis=-1, keepdims=True), 0.0, res_c)
    res = _projx(mv, c)
    hb = _projx(_expmap0(bias.reshape(1, -1), c), c)
    return _projx(_mobius_add(res, hb, c), c)


# ----------------------------- main --------------------------------------------

if __name__ == "__main__":
    key = jax.random.PRNGKey(0)
    k_x, k_w, k_b = jax.random.split(key, 3)

    batch, seq = 2, 8
    in_features, out_features = 32, 64
    N = batch * seq

    # Parameters matching the module's __init__: xavier_uniform(gain=sqrt(2)), bias=0.
    gain = math.sqrt(2.0)
    bound = gain * math.sqrt(6.0 / (in_features + out_features))
    weight = jax.random.uniform(
        k_w, (out_features, in_features), jnp.float32, minval=-bound, maxval=bound
    )
    bias0 = jnp.zeros((out_features,), jnp.float32)                     # module default
    bias1 = 0.1 * jax.random.normal(k_b, (out_features,), jnp.float32)  # exercises mobius_add

    # Input: points on the Poincare ball (expmap0 of random tangent vectors).
    u = 0.5 * jax.random.normal(k_x, (N, in_features), jnp.float32)
    x = _projx(_expmap0(u, 1.0), 1.0)

    # 1) f32 weights, default zero bias (module defaults) — tight tolerance.
    params = prepare_mobius_params(weight, bias0, c=1.0, matmul_dtype=jnp.float32)
    out = jax.block_until_ready(
        mobius_linear(x, *params, c=1.0, out_features=out_features, tm=256))
    ref = _reference(x, weight, bias0, c=1.0)
    np.testing.assert_allclose(np.asarray(out), np.asarray(ref), atol=1e-3, rtol=1e-3)
    assert out.shape == (N, out_features)

    # 2) f32 weights, non-zero bias — exercises mobius_add + analytic final projx.
    params = prepare_mobius_params(weight, bias1, c=1.0, matmul_dtype=jnp.float32)
    out = jax.block_until_ready(
        mobius_linear(x, *params, c=1.0, out_features=out_features, tm=256))
    ref1 = _reference(x, weight, bias1, c=1.0)
    np.testing.assert_allclose(np.asarray(out), np.asarray(ref1), atol=1e-3, rtol=1e-3)

    # 3) bf16 weights (default fast path) — full MXU rate, looser tolerance.
    params = prepare_mobius_params(weight, bias1, c=1.0)   # matmul_dtype=bf16 default
    out = jax.block_until_ready(
        mobius_linear(x, *params, c=1.0, out_features=out_features, tm=256))
    np.testing.assert_allclose(np.asarray(out), np.asarray(ref1), atol=3e-2, rtol=3e-2)

    print("KERNEL_OK")
</pallas_src>

<mosaic_0001>
module attributes {stable_mosaic.version = 11 : i64} {
  func.func @_mobius_linear_kernel(%arg0: i32, %arg1: memref<16x128xf32, #tpu.memory_space<vmem>>, %arg2: memref<128x128xf32, #tpu.memory_space<vmem>>, %arg3: memref<128x128xf32, #tpu.memory_space<vmem>>, %arg4: memref<1x128xf32, #tpu.memory_space<vmem>>, %arg5: memref<1x1xf32, #tpu.memory_space<vmem>>, %arg6: memref<16x128xf32, #tpu.memory_space<vmem>>) attributes {dimension_semantics = [#tpu.dimension_semantics<parallel>], iteration_bounds = array<i64: 1>, scalar_prefetch = 0 : i64, scratch_operands = 0 : i64, tpu.core_type = #tpu.core_type<tc>, window_params = [{transform_indices = @transform_0, window_bounds = array<i64: 16, 128>}, {pipeline_mode = #tpu.pipeline_mode<synchronous>, transform_indices = @transform_1, window_bounds = array<i64: 128, 128>}, {pipeline_mode = #tpu.pipeline_mode<synchronous>, transform_indices = @transform_2, window_bounds = array<i64: 128, 128>}, {pipeline_mode = #tpu.pipeline_mode<synchronous>, transform_indices = @transform_3, window_bounds = array<i64: 1, 128>}, {pipeline_mode = #tpu.pipeline_mode<synchronous>, transform_indices = @transform_4, window_bounds = array<i64: 1, 1>}, {transform_indices = @transform_5, window_bounds = array<i64: 16, 128>}]} {
    %c0 = arith.constant 0 : index
    %c0_0 = arith.constant 0 : index
    %0 = vector.load %arg1[%c0, %c0_0] : memref<16x128xf32, #tpu.memory_space<vmem>>, vector<16x128xf32>
    %c0_1 = arith.constant 0 : index
    %c0_2 = arith.constant 0 : index
    %1 = vector.load %arg4[%c0_1, %c0_2] : memref<1x128xf32, #tpu.memory_space<vmem>>, vector<1x128xf32>
    %c0_3 = arith.constant 0 : index
    %c0_4 = arith.constant 0 : index
    %2 = vector.load %arg5[%c0_3, %c0_4] : memref<1x1xf32, #tpu.memory_space<vmem>>, vector<1x1xf32>
    %cst = arith.constant 1.000000e+00 : f32
    %3 = math.sqrt %cst : f32
    %cst_5 = arith.constant 0.995999991 : f32
    %4 = arith.divf %cst_5, %3 : f32
    %5 = arith.mulf %0, %0 : vector<16x128xf32>
    %cst_6 = arith.constant dense<0.000000e+00> : vector<16xf32>
    %6 = vector.multi_reduction <add>, %5, %cst_6 [1] : vector<16x128xf32> to vector<16xf32>
    %7 = vector.shape_cast %6 : vector<16xf32> to vector<16x1xf32>
    %8 = math.sqrt %7 : vector<16x1xf32>
    %cst_7 = arith.constant 1.000000e-15 : f32
    %9 = vector.broadcast %cst_7 : f32 to vector<16x1xf32>
    %10 = arith.maximumf %8, %9 : vector<16x1xf32>
    %c0_8 = arith.constant 0 : index
    %c0_9 = arith.constant 0 : index
    %11 = vector.load %arg2[%c0_8, %c0_9] : memref<128x128xf32, #tpu.memory_space<vmem>>, vector<128x128xf32>
    %cst_10 = arith.constant dense<0.000000e+00> : vector<16x128xf32>
    %12 = tpu.matmul %0, %11, %cst_10 {dimension_numbers = #tpu.dot_dimension_numbers<[1], [0], [0], [1], [0, 0, 1, 1], [], []>} : vector<16x128xf32>, vector<128x128xf32>, vector<16x128xf32> -> vector<16x128xf32>
    %c0_11 = arith.constant 0 : index
    %c0_12 = arith.constant 0 : index
    %13 = vector.load %arg3[%c0_11, %c0_12] : memref<128x128xf32, #tpu.memory_space<vmem>>, vector<128x128xf32>
    %cst_13 = arith.constant dense<0.000000e+00> : vector<16x128xf32>
    %14 = tpu.matmul %0, %13, %cst_13 {dimension_numbers = #tpu.dot_dimension_numbers<[1], [0], [0], [1], [0, 0, 1, 1], [], []>} : vector<16x128xf32>, vector<128x128xf32>, vector<16x128xf32> -> vector<16x128xf32>
    %15 = vector.extract_strided_slice %14 {offsets = [0, 0], sizes = [16, 1], strides = [1, 1]} : vector<16x128xf32> to vector<16x1xf32>
    %16 = arith.mulf %12, %12 : vector<16x128xf32>
    %cst_14 = arith.constant dense<0.000000e+00> : vector<16xf32>
    %17 = vector.multi_reduction <add>, %16, %cst_14 [1] : vector<16x128xf32> to vector<16xf32>
    %18 = vector.shape_cast %17 : vector<16xf32> to vector<16x1xf32>
    %19 = math.sqrt %18 : vector<16x1xf32>
    %cst_15 = arith.constant 1.000000e-15 : f32
    %20 = vector.broadcast %cst_15 : f32 to vector<16x1xf32>
    %21 = arith.maximumf %19, %20 : vector<16x1xf32>
    %22 = tpu.reciprocal %10 {approx = true} : vector<16x1xf32> -> vector<16x1xf32>
    %23 = arith.mulf %10, %22 : vector<16x1xf32>
    %cst_16 = arith.constant 2.000000e+00 : f32
    %24 = vector.broadcast %cst_16 : f32 to vector<16x1xf32>
    %25 = arith.subf %24, %23 : vector<16x1xf32>
    %26 = arith.mulf %22, %25 : vector<16x1xf32>
    %27 = arith.mulf %21, %26 : vector<16x1xf32>
    %28 = vector.broadcast %3 : f32 to vector<16x1xf32>
    %29 = arith.mulf %28, %10 : vector<16x1xf32>
    %cst_17 = arith.constant -0.99999988 : f32
    %cst_18 = arith.constant 0.99999988 : f32
    %30 = vector.broadcast %cst_17 : f32 to vector<16x1xf32>
    %31 = arith.maximumf %30, %29 : vector<16x1xf32>
    %32 = vector.broadcast %cst_18 : f32 to vector<16x1xf32>
    %33 = arith.minimumf %32, %31 : vector<16x1xf32>
    %cst_19 = arith.constant 1.000000e+00 : f32
    %34 = vector.broadcast %cst_19 : f32 to vector<16x1xf32>
    %35 = arith.addf %34, %33 : vector<16x1xf32>
    %cst_20 = arith.constant 1.000000e+00 : f32
    %36 = vector.broadcast %cst_20 : f32 to vector<16x1xf32>
    %37 = arith.subf %36, %33 : vector<16x1xf32>
    %38 = arith.divf %35, %37 : vector<16x1xf32>
    %39 = math.log %38 : vector<16x1xf32>
    %cst_21 = arith.constant 5.000000e-01 : f32
    %40 = vector.broadcast %cst_21 : f32 to vector<16x1xf32>
    %41 = arith.mulf %40, %39 : vector<16x1xf32>
    %42 = arith.mulf %27, %41 : vector<16x1xf32>
    %43 = math.tanh %42 : vector<16x1xf32>
    %44 = vector.broadcast %3 : f32 to vector<16x1xf32>
    %45 = arith.mulf %21, %44 : vector<16x1xf32>
    %46 = tpu.reciprocal %45 {approx = true} : vector<16x1xf32> -> vector<16x1xf32>
    %47 = arith.mulf %45, %46 : vector<16x1xf32>
    %cst_22 = arith.constant 2.000000e+00 : f32
    %48 = vector.broadcast %cst_22 : f32 to vector<16x1xf32>
    %49 = arith.subf %48, %47 : vector<16x1xf32>
    %50 = arith.mulf %46, %49 : vector<16x1xf32>
    %51 = arith.mulf %43, %50 : vector<16x1xf32>
    %cst_23 = arith.constant 0.000000e+00 : f32
    %52 = vector.broadcast %cst_23 : f32 to vector<16x1xf32>
    %53 = arith.cmpf ogt, %18, %52 : vector<16x1xf32>
    %cst_24 = arith.constant 0.000000e+00 : f32
    %54 = vector.broadcast %cst_24 : f32 to vector<16x1xf32>
    %55 = arith.select %53, %51, %54 : vector<16x1xi1>, vector<16x1xf32>
    %56 = arith.mulf %55, %55 : vector<16x1xf32>
    %57 = arith.mulf %56, %18 : vector<16x1xf32>
    %58 = math.sqrt %57 : vector<16x1xf32>
    %cst_25 = arith.constant 1.000000e-15 : f32
    %59 = vector.broadcast %cst_25 : f32 to vector<16x1xf32>
    %60 = arith.maximumf %58, %59 : vector<16x1xf32>
    %61 = vector.broadcast %4 : f32 to vector<16x1xf32>
    %62 = arith.cmpf ogt, %60, %61 : vector<16x1xf32>
    %63 = tpu.reciprocal %60 {approx = true} : vector<16x1xf32> -> vector<16x1xf32>
    %64 = arith.mulf %60, %63 : vector<16x1xf32>
    %cst_26 = arith.constant 2.000000e+00 : f32
    %65 = vector.broadcast %cst_26 : f32 to vector<16x1xf32>
    %66 = arith.subf %65, %64 : vector<16x1xf32>
    %67 = arith.mulf %63, %66 : vector<16x1xf32>
    %68 = vector.broadcast %4 : f32 to vector<16x1xf32>
    %69 = arith.mulf %68, %67 : vector<16x1xf32>
    %cst_27 = arith.constant 1.000000e+00 : f32
    %70 = vector.broadcast %cst_27 : f32 to vector<16x1xf32>
    %71 = arith.select %62, %69, %70 : vector<16x1xi1>, vector<16x1xf32>
    %72 = arith.mulf %55, %71 : vector<16x1xf32>
    %73 = arith.mulf %72, %72 : vector<16x1xf32>
    %74 = arith.mulf %73, %18 : vector<16x1xf32>
    %cst_28 = arith.constant 2.000000e+00 : f32
    %cst_29 = arith.constant 1.000000e+00 : f32
    %75 = arith.mulf %cst_28, %cst_29 : f32
    %76 = vector.broadcast %75 : f32 to vector<16x1xf32>
    %77 = arith.mulf %76, %72 : vector<16x1xf32>
    %78 = arith.mulf %77, %15 : vector<16x1xf32>
    %cst_30 = arith.constant 1.000000e+00 : f32
    %79 = vector.broadcast %cst_30 : f32 to vector<16x1xf32>
    %80 = arith.addf %79, %78 : vector<16x1xf32>
    %cst_31 = arith.constant 1.000000e+00 : f32
    %81 = vector.broadcast %cst_31 : f32 to vector<1x1xf32>
    %82 = arith.mulf %81, %2 : vector<1x1xf32>
    %83 = vector.broadcast %82 : vector<1x1xf32> to vector<16x1xf32>
    %84 = arith.addf %80, %83 : vector<16x1xf32>
    %cst_32 = arith.constant 1.000000e+00 : f32
    %85 = vector.broadcast %cst_32 : f32 to vector<16x1xf32>
    %86 = arith.addf %85, %78 : vector<16x1xf32>
    %cst_33 = arith.constant 1.000000e+00 : f32
    %cst_34 = arith.constant 1.000000e+00 : f32
    %87 = arith.mulf %cst_33, %cst_34 : f32
    %88 = vector.broadcast %87 : f32 to vector<16x1xf32>
    %89 = arith.mulf %88, %74 : vector<16x1xf32>
    %90 = vector.broadcast %2 : vector<1x1xf32> to vector<16x1xf32>
    %91 = arith.mulf %89, %90 : vector<16x1xf32>
    %92 = arith.addf %86, %91 : vector<16x1xf32>
    %cst_35 = arith.constant 1.000000e-15 : f32
    %93 = vector.broadcast %cst_35 : f32 to vector<16x1xf32>
    %94 = arith.maximumf %92, %93 : vector<16x1xf32>
    %95 = tpu.reciprocal %94 {approx = true} : vector<16x1xf32> -> vector<16x1xf32>
    %96 = arith.mulf %94, %95 : vector<16x1xf32>
    %cst_36 = arith.constant 2.000000e+00 : f32
    %97 = vector.broadcast %cst_36 : f32 to vector<16x1xf32>
    %98 = arith.subf %97, %96 : vector<16x1xf32>
    %99 = arith.mulf %95, %98 : vector<16x1xf32>
    %100 = arith.mulf %84, %72 : vector<16x1xf32>
    %101 = arith.mulf %100, %99 : vector<16x1xf32>
    %cst_37 = arith.constant 1.000000e+00 : f32
    %102 = vector.broadcast %cst_37 : f32 to vector<16x1xf32>
    %103 = arith.mulf %102, %74 : vector<16x1xf32>
    %cst_38 = arith.constant 1.000000e+00 : f32
    %104 = vector.broadcast %cst_38 : f32 to vector<16x1xf32>
    %105 = arith.subf %104, %103 : vector<16x1xf32>
    %106 = arith.mulf %105, %99 : vector<16x1xf32>
    %107 = arith.mulf %101, %101 : vector<16x1xf32>
    %108 = arith.mulf %107, %18 : vector<16x1xf32>
    %cst_39 = arith.constant 2.000000e+00 : f32
    %109 = vector.broadcast %cst_39 : f32 to vector<16x1xf32>
    %110 = arith.mulf %109, %101 : vector<16x1xf32>
    %111 = arith.mulf %110, %106 : vector<16x1xf32>
    %112 = arith.mulf %111, %15 : vector<16x1xf32>
    %113 = arith.addf %108, %112 : vector<16x1xf32>
    %114 = arith.mulf %106, %106 : vector<16x1xf32>
    %115 = vector.broadcast %2 : vector<1x1xf32> to vector<16x1xf32>
    %116 = arith.mulf %114, %115 : vector<16x1xf32>
    %117 = arith.addf %113, %116 : vector<16x1xf32>
    %cst_40 = arith.constant 0.000000e+00 : f32
    %118 = vector.broadcast %cst_40 : f32 to vector<16x1xf32>
    %119 = arith.maximumf %117, %118 : vector<16x1xf32>
    %120 = math.sqrt %119 : vector<16x1xf32>
    %cst_41 = arith.constant 1.000000e-15 : f32
    %121 = vector.broadcast %cst_41 : f32 to vector<16x1xf32>
    %122 = arith.maximumf %120, %121 : vector<16x1xf32>
    %123 = vector.broadcast %4 : f32 to vector<16x1xf32>
    %124 = arith.cmpf ogt, %122, %123 : vector<16x1xf32>
    %125 = tpu.reciprocal %122 {approx = true} : vector<16x1xf32> -> vector<16x1xf32>
    %126 = arith.mulf %122, %125 : vector<16x1xf32>
    %cst_42 = arith.constant 2.000000e+00 : f32
    %127 = vector.broadcast %cst_42 : f32 to vector<16x1xf32>
    %128 = arith.subf %127, %126 : vector<16x1xf32>
    %129 = arith.mulf %125, %128 : vector<16x1xf32>
    %130 = vector.broadcast %4 : f32 to vector<16x1xf32>
    %131 = arith.mulf %130, %129 : vector<16x1xf32>
    %cst_43 = arith.constant 1.000000e+00 : f32
    %132 = vector.broadcast %cst_43 : f32 to vector<16x1xf32>
    %133 = arith.select %124, %131, %132 : vector<16x1xi1>, vector<16x1xf32>
    %134 = arith.mulf %101, %133 : vector<16x1xf32>
    %135 = vector.broadcast %134 : vector<16x1xf32> to vector<16x128xf32>
    %136 = arith.mulf %135, %12 : vector<16x128xf32>
    %137 = arith.mulf %106, %133 : vector<16x1xf32>
    %138 = vector.broadcast %137 : vector<16x1xf32> to vector<16x128xf32>
    %139 = vector.broadcast %1 : vector<1x128xf32> to vector<16x128xf32>
    %140 = arith.mulf %138, %139 : vector<16x128xf32>
    %141 = arith.addf %136, %140 : vector<16x128xf32>
    %c0_44 = arith.constant 0 : index
    %c0_45 = arith.constant 0 : index
    %142 = vector.load %arg6[%c0_44, %c0_45] : memref<16x128xf32, #tpu.memory_space<vmem>>, vector<16x128xf32>
    tpu.vector_store %arg6[%c0_44, %c0_45], %141 {strides = array<i32>} : memref<16x128xf32, #tpu.memory_space<vmem>>, vector<16x128xf32>,
    return
  }
  func.func @transform_0(%arg0: i32) -> (i32, i32) {
    %c0_i32 = arith.constant 0 : i32
    %c0_i32_0 = arith.constant 0 : i32
    return %arg0, %c0_i32 : i32, i32
  }
  func.func @transform_1(%arg0: i32) -> (i32, i32) {
    %c0_i32 = arith.constant 0 : i32
    %c0_i32_0 = arith.constant 0 : i32
    %c0_i32_1 = arith.constant 0 : i32
    return %c0_i32, %c0_i32_0 : i32, i32
  }
  func.func @transform_2(%arg0: i32) -> (i32, i32) {
    %c0_i32 = arith.constant 0 : i32
    %c0_i32_0 = arith.constant 0 : i32
    %c0_i32_1 = arith.constant 0 : i32
    return %c0_i32, %c0_i32_0 : i32, i32
  }
  func.func @transform_3(%arg0: i32) -> (i32, i32) {
    %c0_i32 = arith.constant 0 : i32
    %c0_i32_0 = arith.constant 0 : i32
    %c0_i32_1 = arith.constant 0 : i32
    return %c0_i32, %c0_i32_0 : i32, i32
  }
  func.func @transform_4(%arg0: i32) -> (i32, i32) {
    %c0_i32 = arith.constant 0 : i32
    %c0_i32_0 = arith.constant 0 : i32
    %c0_i32_1 = arith.constant 0 : i32
    return %c0_i32, %c0_i32_0 : i32, i32
  }
  func.func @transform_5(%arg0: i32) -> (i32, i32) {
    %c0_i32 = arith.constant 0 : i32
    %c0_i32_0 = arith.constant 0 : i32
    return %arg0, %c0_i32 : i32, i32
  }
}

</mosaic_0001>

<bundles_post_ra>
// kernel: tpu_custom_call.1
= control target key start
LH: loop header
LB: loop body
LE: loop exit
PB: predicated region body
PF: predicated region fallthrough
CT: control target
= control target key end

     0   :  { %s1011_s0 = inlined_call_operand.hbm [shape: f32[16,128], index: 0, kind: input, shape index: {}]   ;;  %s1012_s1 = inlined_call_operand.hbm [shape: f32[128,128], index: 1, kind: input, shape index: {}]   ;;  %s1013_s2 = inlined_call_operand.hbm [shape: f32[128,128], index: 2, kind: input, shape index: {}]   ;;  %s1014_s3 = inlined_call_operand.vmem [shape: f32[1,128], index: 3, kind: input, shape index: {}]   ;;  %s1015_s4 = inlined_call_operand.<no memory space> [shape: f32[1,1], index: 4, kind: input, shape index: {}]   ;;  %s1016_s5 = inlined_call_operand.hbm [shape: f32[16,128], index: 5, kind: output, shape index: {}]  }
   0x1   :  { %v10_v0 = vstv %s1015_s4 }
   0x2   :  { %11 = vst [vmem:[#allocation2] sm:$0x1] %v10_v0 }
   0x3   :  { %12 = vsyncpa [#allocation4], 0 }
   0x4   :  { %13 = vsyncpa [#allocation7], 0 }
   0x5   :  { %14 = vsyncpa [#allocation5], 0  ;;  %s847_s20 = smov [#allocation6]   ;;  %s848_s22 = smov [#allocation3]  }
   0x6   :  { %s32_s21 = sshll.u32 %s847_s20, 4  ;;  %s20_s23 = sshll.u32 %s848_s22, 4  ;;  %s33_s21 = int_to_ptr.vmem [resolvable:$true] %s32_s21  ;;  %s887_s23 = int_to_ptr.vmem [resolvable:$true] %s20_s23 }
   0x7   :  { %s753_s26 = scalar_lea.hbm %s1012_s1, 2048 }
   0x8   :  { %p754_p0 = scmp.ne.s32.totalorder %s1012_s1, %s753_s26  ;;  %p757_p1 = scmp.lt.u32.totalorder %s753_s26, %s1012_s1 }
   0xa   :  { %p759_p2 = pnand %p757_p1, %p754_p0 }
   0xc   :  { %762 = shalt.err (!%p759_p2)
}
   0xd   :  { %s763_s30 = scalar_lea.vmem %s33_s21, 2048  ;;  %p768_p4 = scmp.lt.s32.totalorder %s33_s21, %s33_s21 }
   0xe   :  { %p764_p3 = scmp.ne.s32.totalorder %s33_s21, %s763_s30  ;;  %p769_p5 = scmp.lt.s32.totalorder %s763_s30, %s763_s30 }
  0x10   :  { %p770_p6 = por %p769_p5, %p768_p4 }
  0x12   :  { %p771_p7 = pnand %p770_p6, %p764_p3 }
  0x14   :  { %774 = shalt.err (!%p771_p7)
}
  0x15   :  { %s849_s6 = smov 128   ;;  %s850_s7 = smov 8  }
  0x16   :  { %38 = dma.hbm_to_vmem [thread:$0]  %s1012_s1, 2048, %s33_s21, [#allocation7], %s849_s6, %s849_s6, %s850_s7  }
  0x17   :  { %s775_s12 = scalar_lea.hbm %s1011_s0, 256 }
  0x18   :  { %p776_p8 = scmp.ne.s32.totalorder %s1011_s0, %s775_s12  ;;  %p779_p9 = scmp.lt.u32.totalorder %s775_s12, %s1011_s0 }
  0x1a   :  { %p781_p10 = pnand %p779_p9, %p776_p8 }
  0x1c   :  { %784 = shalt.err (!%p781_p10)
}
  0x1d   :  { %s785_s17 = scalar_lea.vmem %s887_s23, 256  ;;  %p790_p12 = scmp.lt.s32.totalorder %s887_s23, %s887_s23 }
  0x1e   :  { %p786_p11 = scmp.ne.s32.totalorder %s887_s23, %s785_s17  ;;  %p791_p13 = scmp.lt.s32.totalorder %s785_s17, %s785_s17 }
  0x20   :  { %p792_p0 = por %p791_p13, %p790_p12 }
  0x22   :  { %p793_p1 = pnand %p792_p0, %p786_p11 }
  0x24   :  { %796 = shalt.err (!%p793_p1)
}
  0x25   :  { %26 = dma.hbm_to_vmem [thread:$0]  %s1011_s0, 256, %s887_s23, [#allocation4], %s849_s6, %s849_s6, %s850_s7  }
  0x26   :  { %s851_s19 = smov [#allocation8]   ;;  %s797_s24 = scalar_lea.hbm %s1013_s2, 2048 }
  0x27   :  { %s44_s20 = sshll.u32 %s851_s19, 4  ;;  %p798_p2 = scmp.ne.s32.totalorder %s1013_s2, %s797_s24  ;;  %s45_s20 = int_to_ptr.vmem [resolvable:$true] %s44_s20 }
  0x28   :  { %p801_p3 = scmp.lt.u32.totalorder %s797_s24, %s1013_s2 }
  0x2a   :  { %p803_p4 = pnand %p801_p3, %p798_p2 }
  0x2c   :  { %806 = shalt.err (!%p803_p4)
}
  0x2d   :  { %s807_s4 = scalar_lea.vmem %s45_s20, 2048  ;;  %p812_p6 = scmp.lt.s32.totalorder %s45_s20, %s45_s20 }
  0x2e   :  { %p808_p5 = scmp.ne.s32.totalorder %s45_s20, %s807_s4  ;;  %p813_p7 = scmp.lt.s32.totalorder %s807_s4, %s807_s4 }
  0x30   :  { %p814_p8 = por %p813_p7, %p812_p6 }
  0x32   :  { %p815_p9 = pnand %p814_p8, %p808_p5 }
  0x34   :  { %818 = shalt.err (!%p815_p9)
}
  0x35   :  { %50 = dma.hbm_to_vmem [thread:$0]  %s1013_s2, 2048, %s45_s20, [#allocation7], %s849_s6, %s849_s6, %s850_s7  }
  0x36   :  { %841 = dma.done.wait [#allocation4], 256  }
  0x37   :  { %842 = vsyncadd [#allocation4], 4294967040 }
  0x38   :  { %843 = dma.done.wait [#allocation7], 4096  }
  0x39   :  { %844 = vsyncadd [#allocation7], 4294963200  ;;  %v90_v1 = vld [vmem:[#allocation6] sm:$0xff]  ;;  %v91_v2 = vld [vmem:[#allocation6 + $0x8] sm:$0xff]  ;;  %s853_s30 = smov [#allocation9]  }
  0x3a   :  { %v92_v3 = vld [vmem:[#allocation6 + $0x10] sm:$0xff]  ;;  %v632_v4 = vpack.c.bf16 %v91_v2, %v90_v1  ;;  %v93_v5 = vld [vmem:[#allocation6 + $0x18] sm:$0xff]  ;;  %v94_v7 = vld [vmem:[#allocation6 + $0x20] sm:$0xff]  ;;  %s509_s8 = sshll.u32 %s853_s30, 4  ;;  %s510_s8 = int_to_ptr.vmem [resolvable:$true] %s509_s8 }
  0x3b   :  { %v636_v6 = vpack.c.bf16 %v93_v5, %v92_v3  ;;  %v95_v8 = vld [vmem:[#allocation6 + $0x28] sm:$0xff]  ;;  %v96_v10 = vld [vmem:[#allocation6 + $0x30] sm:$0xff]  ;;  %v97_v11 = vld [vmem:[#allocation6 + $0x38] sm:$0xff]  ;;  %s819_s9 = scalar_lea.vmem %s510_s8, 256  ;;  %p824_p11 = scmp.lt.s32.totalorder %s510_s8, %s510_s8 }
  0x3c   :  { %633 = vmatprep.subr.bf16.mxu0 %v632_v4  ;;  %v640_v9 = vpack.c.bf16 %v95_v8, %v94_v7  ;;  %v64_v12 = vld [vmem:[#allocation3] sm:$0xff]  ;;  %v181_v14 = vld [vmem:[#allocation8] sm:$0xff]  ;;  %v182_v15 = vld [vmem:[#allocation8 + $0x8] sm:$0xff]  ;;  %v644_v24 = vpack.c.bf16 %v97_v11, %v96_v10  ;;  %p820_p10 = scmp.ne.s32.totalorder %s510_s8, %s819_s9  ;;  %p825_p12 = scmp.lt.s32.totalorder %s819_s9, %s819_s9 }
  0x3d   :  { %635 = vmatpush3.bf16.msra.mxu0 %v632_v4  ;;  %594 = vmatprep.mubr.f32.mxu0 %v64_v12  ;;  %v68_v13 = vmul.f32 %v64_v12, %v64_v12  ;;  %v183_v16 = vld [vmem:[#allocation8 + $0x10] sm:$0xff]  ;;  %v939_v17 = vld [vmem:[#allocation3 + $0x8] sm:$0xff]  ;;  %v664_v18 = vpack.c.bf16 %v182_v15, %v181_v14  ;;  %v185_v22 = vld [vmem:[#allocation8 + $0x20] sm:$0xff] }
  0x3e   :  { %637 = vmatprep.subr.bf16.mxu0 %v636_v6  ;;  %629 = vmatprep.mubr.f32.mxu1 %v64_v12  ;;  %v184_v19 = vld [vmem:[#allocation8 + $0x18] sm:$0xff]  ;;  %v69_v20 = vmul.f32 %v939_v17, %v939_v17  ;;  %v186_v23 = vld [vmem:[#allocation8 + $0x28] sm:$0xff]  ;;  %v98_v25 = vld [vmem:[#allocation6 + $0x40] sm:$0xff]  ;;  %p826_p13 = por %p825_p12, %p824_p11 }
  0x3f   :  { %70 = vadd.xlane.f32.xlu0 %v68_v13  ;;  %v668_v21 = vpack.c.bf16 %v184_v19, %v183_v16  ;;  %665 = vmatprep.subr.bf16.mxu1 %v664_v18  ;;  %v99_v26 = vld [vmem:[#allocation6 + $0x48] sm:$0xff]  ;;  %v672_v27 = vpack.c.bf16 %v186_v23, %v185_v22  ;;  %v187_v28 = vld [vmem:[#allocation8 + $0x30] sm:$0xff]  ;;  %v188_v29 = vld [vmem:[#allocation8 + $0x38] sm:$0xff] }
  0x40   :  { %667 = vmatpush3.bf16.msra.mxu1 %v664_v18  ;;  %v648_v30 = vpack.c.bf16 %v99_v26, %v98_v25  ;;  %v100_v31 = vld [vmem:[#allocation6 + $0x50] sm:$0xff]  ;;  %v101_v32 = vld [vmem:[#allocation6 + $0x58] sm:$0xff]  ;;  %v676_v33 = vpack.c.bf16 %v188_v29, %v187_v28  ;;  %v189_v34 = vld [vmem:[#allocation8 + $0x40] sm:$0xff]  ;;  %v852_v18 = vmov 0   ;;  %p827_p0 = pnand %p826_p13, %p820_p10 }
  0x41   :  { %639 = vmatpush3.bf16.msra.mxu0 %v636_v6  ;;  %669 = vmatprep.subr.bf16.mxu1 %v668_v21  ;;  %v190_v35 = vld [vmem:[#allocation8 + $0x48] sm:$0xff]  ;;  %v652_v36 = vpack.c.bf16 %v101_v32, %v100_v31  ;;  %v102_v37 = vld [vmem:[#allocation6 + $0x60] sm:$0xff]  ;;  %v104_v41 = vld [vmem:[#allocation6 + $0x70] sm:$0xff] }
  0x42   :  { %641 = vmatprep.subr.bf16.mxu0 %v640_v9  ;;  %v103_v38 = vld [vmem:[#allocation6 + $0x68] sm:$0xff]  ;;  %v680_v39 = vpack.c.bf16 %v190_v35, %v189_v34  ;;  %v105_v42 = vld [vmem:[#allocation6 + $0x78] sm:$0xff]  ;;  %v191_v44 = vld [vmem:[#allocation8 + $0x50] sm:$0xff]  ;;  %703 = vset.pattern.permute.xlu0 %v852_v18 }
  0x43   :  { %72 = vadd.xlane.f32.xlu0 %v69_v20  ;;  %v656_v40 = vpack.c.bf16 %v103_v38, %v102_v37  ;;  %v660_v43 = vpack.c.bf16 %v105_v42, %v104_v41  ;;  %v192_v45 = vld [vmem:[#allocation8 + $0x58] sm:$0xff]  ;;  %v193_v47 = vld [vmem:[#allocation8 + $0x60] sm:$0xff]  ;;  %v194_v48 = vld [vmem:[#allocation8 + $0x68] sm:$0xff]  ;;  %704 = vset.pattern.permute.xlu1 %v852_v18 }
  0x44   :  { %671 = vmatpush3.bf16.msra.mxu1 %v668_v21  ;;  %v684_v46 = vpack.c.bf16 %v192_v45, %v191_v44  ;;  %v688_v49 = vpack.c.bf16 %v194_v48, %v193_v47  ;;  %v195_v50 = vld [vmem:[#allocation8 + $0x70] sm:$0xff]  ;;  %v196_v51 = vld [vmem:[#allocation8 + $0x78] sm:$0xff] }
  0x45   :  { %643 = vmatpush3.bf16.msra.mxu0 %v640_v9  ;;  %673 = vmatprep.subr.bf16.mxu1 %v672_v27  ;;  %v692_v52 = vpack.c.bf16 %v196_v51, %v195_v50 }
  0x46   :  { %645 = vmatprep.subr.bf16.mxu0 %v644_v24 }
  0x48   :  { %675 = vmatpush3.bf16.msra.mxu1 %v672_v27 }
  0x49   :  { %647 = vmatpush3.bf16.msra.mxu0 %v644_v24  ;;  %677 = vmatprep.subr.bf16.mxu1 %v676_v33 }
  0x4a   :  { %649 = vmatprep.subr.bf16.mxu0 %v648_v30 }
  0x4c   :  { %679 = vmatpush3.bf16.msra.mxu1 %v676_v33 }
  0x4d   :  { %651 = vmatpush3.bf16.msra.mxu0 %v648_v30  ;;  %681 = vmatprep.subr.bf16.mxu1 %v680_v39 }
  0x4e   :  { %653 = vmatprep.subr.bf16.mxu0 %v652_v36 }
  0x50   :  { %683 = vmatpush3.bf16.msra.mxu1 %v680_v39 }
  0x51   :  { %655 = vmatpush3.bf16.msra.mxu0 %v652_v36  ;;  %685 = vmatprep.subr.bf16.mxu1 %v684_v46 }
  0x52   :  { %657 = vmatprep.subr.bf16.mxu0 %v656_v40 }
  0x54   :  { %687 = vmatpush3.bf16.msra.mxu1 %v684_v46 }
  0x55   :  { %659 = vmatpush3.bf16.msra.mxu0 %v656_v40  ;;  %689 = vmatprep.subr.bf16.mxu1 %v688_v49 }
  0x56   :  { %661 = vmatprep.subr.bf16.mxu0 %v660_v43 }
  0x58   :  { %691 = vmatpush3.bf16.msra.mxu1 %v688_v49 }
  0x59   :  { %663 = vmatpush3.bf16.msra.mxu0 %v660_v43  ;;  %693 = vmatprep.subr.bf16.mxu1 %v692_v52 }
  0x5c   :  { %595 = vmatmul.mubr.f32.vlgmr.msra.gmra.mrb[0].mxu0 %v939_v17  ;;  %695 = vmatpush3.bf16.msra.mxu1 %v692_v52 }
  0x5f   :  { %630 = vmatmul.mubr.f32.vlgmr.msra.gmra.mrb[0].mxu1 %v939_v17 }
  0xcc   :  { %v71_v57 = vpop.xlane.xlu0 %70 }
  0xcd   :  { %705 = vrsqrt.f32 %v71_v57  ;;  %vm76_vm0 = vcmp.eq.f32.partialorder %v71_v57, inf  ;;  %v79_v0 = vand.u32 2147483648, %v71_v57  ;;  %vm78_vm1 = vcmp.eq.f32.partialorder %v71_v57, 0.0 }
  0xd0   :  { %v73_v58 = vpop.xlane.xlu0 %72 }
  0xd1   :  { %707 = vrsqrt.f32 %v73_v58  ;;  %vm83_vm2 = vcmp.eq.f32.partialorder %v73_v58, inf  ;;  %v86_v4 = vand.u32 2147483648, %v73_v58  ;;  %vm85_vm3 = vcmp.eq.f32.partialorder %v73_v58, 0.0 }
  0xd7   :  { %v706_v61 = vpop.eup %705 }
  0xd8   :  { %v75_v62 = vmul.f32 %v706_v61, %v71_v57 }
  0xda   :  { %v77_v1 = vsel %vm76_vm0, %v71_v57, %v75_v62 }
  0xdb   :  { %v708_v63 = vpop.eup %707  ;;  %v80_v3 = vsel %vm78_vm1, %v79_v0, %v77_v1 }
  0xdc   :  { %v82_v2 = vmul.f32 %v708_v63, %v73_v58  ;;  %v88_v6 = vmax.f32 %v80_v3, 1e-15 }
  0xde   :  { %v84_v5 = vsel %vm83_vm2, %v73_v58, %v82_v2  ;;  %v522_v8 = vclamps-f32 %v88_v6, 0.9999999 }
  0xdf   :  { %v87_v7 = vsel %vm85_vm3, %v86_v4, %v84_v5 }
  0xe0   :  { %v89_v9 = vmax.f32 %v87_v7, 1e-15  ;;  %v310_v10 = vsub.f32 1.0, %v522_v8  ;;  %v308_v13 = vadd.f32 1.0, %v522_v8 }
  0xe2   :  { %v523_v11 = vclamps-f32 %v89_v9, 0.9999999  ;;  %709 = vrcp.f32 %v310_v10 }
  0xe4   :  { %v311_v12 = vsub.f32 1.0, %v523_v11  ;;  %v309_v16 = vadd.f32 1.0, %v523_v11 }
  0xe6   :  { %711 = vrcp.f32 %v311_v12 }
  0xe7   :  { %713 = vrcp.f32 %v88_v6 }
  0xe8   :  { %715 = vrcp.f32 %v89_v9 }
  0xec   :  { %v710_v14 = vpop.eup %709 }
  0xed   :  { %v313_v15 = vmul.f32 %v710_v14, %v308_v13 }
  0xef   :  { %717 = vlog2.f32 %v313_v15 }
  0xf0   :  { %v712_v17 = vpop.eup %711 }
  0xf1   :  { %v315_v19 = vmul.f32 %v712_v17, %v309_v16  ;;  %v714_v22 = vpop.eup %713 }
  0xf2   :  { %v296_v23 = vmul.f32 %v714_v22, %v88_v6  ;;  %v716_v24 = vpop.eup %715 }
  0xf3   :  { %v297_v28 = vmul.f32 %v716_v24, %v89_v9 }
  0xf4   :  { %v298_v27 = vsub.f32 2.0, %v296_v23 }
  0xf5   :  { %v299_v37 = vsub.f32 2.0, %v297_v28 }
  0xf6   :  { %v300_v36 = vmul.f32 %v714_v22, %v298_v27 }
  0xf7   :  { %v301_v46 = vmul.f32 %v716_v24, %v299_v37 }
  0xf9   :  { %v718_v25 = vpop.eup %717 }
  0xfa   :  { %v317_v31 = vmul.f32 0.6931472, %v718_v25 }
  0xfc   :  { %v320_v42 = vmul.f32 0.5, %v317_v31 }
 0x12f   :  { %v945_v53 = vpop.f32.mrb[0].mxu0 }
 0x130   :  { %v947_v54 = vpop.f32.mrb[1].mxu0  ;;  %v273_v56 = vmul.f32 %v945_v53, %v945_v53 }
 0x131   :  { %v272_v55 = vmul.f32 %v947_v54, %v947_v54 }
 0x132   :  { %v953_v59 = vpop.f32.mrb[0].mxu1 }
 0x133   :  { %274 = vadd.xlane.f32.xlu1 %v272_v55  ;;  %v955_v60 = vpop.f32.mrb[1].mxu1 }
 0x137   :  { %276 = vadd.xlane.f32.xlu1 %v273_v56 }
 0x1c0   :  { %v957_v20 = vpop.xlane.xlu1 %274 }
 0x1c1   :  { %719 = vrsqrt.f32 %v957_v20  ;;  %vm280_vm4 = vcmp.eq.f32.partialorder %v957_v20, inf  ;;  %v283_v30 = vand.u32 2147483648, %v957_v20  ;;  %vm282_vm5 = vcmp.eq.f32.partialorder %v957_v20, 0.0 }
 0x1c2   :  { %721 = vlog2.f32 %v315_v19  ;;  %vm336_vm8 = vcmp.gt.f32.partialorder %v957_v20, 0.0 }
 0x1c4   :  { %v960_v21 = vpop.xlane.xlu1 %276 }
 0x1c5   :  { %723 = vrsqrt.f32 %v960_v21  ;;  %vm287_vm6 = vcmp.eq.f32.partialorder %v960_v21, inf  ;;  %v290_v40 = vand.u32 2147483648, %v960_v21  ;;  %vm289_vm7 = vcmp.eq.f32.partialorder %v960_v21, 0.0 }
 0x1c6   :  { %vm337_vm9 = vcmp.gt.f32.partialorder %v960_v21, 0.0 }
 0x1cb   :  { %v720_v26 = vpop.eup %719 }
 0x1cc   :  { %v279_v29 = vmul.f32 %v720_v26, %v957_v20  ;;  %v722_v32 = vpop.eup %721 }
 0x1cd   :  { %v319_v41 = vmul.f32 0.6931472, %v722_v32 }
 0x1ce   :  { %v281_v33 = vsel %vm280_vm4, %v957_v20, %v279_v29 }
 0x1cf   :  { %v724_v34 = vpop.eup %723  ;;  %v284_v35 = vsel %vm282_vm5, %v283_v30, %v281_v33  ;;  %v321_v50 = vmul.f32 0.5, %v319_v41 }
 0x1d0   :  { %v286_v38 = vmul.f32 %v724_v34, %v960_v21  ;;  %v292_v39 = vmax.f32 %v284_v35, 1e-15 }
 0x1d2   :  { %v288_v43 = vsel %vm287_vm6, %v960_v21, %v286_v38  ;;  %v302_v44 = vmul.f32 %v300_v36, %v292_v39  ;;  %725 = vrcp.f32 %v292_v39  ;;  %v524_v38 = vld [vmem:[#allocation2] ss:$0 sm:$0xff] }
 0x1d3   :  { %v291_v45 = vsel %vm289_vm7, %v290_v40, %v288_v43 }
 0x1d4   :  { %v293_v47 = vmax.f32 %v291_v45, 1e-15  ;;  %v322_v48 = vmul.f32 %v320_v42, %v302_v44 }
 0x1d6   :  { %v303_v49 = vmul.f32 %v301_v46, %v293_v47  ;;  %727 = vrcp.f32 %v293_v47 }
 0x1d7   :  { %729 = vtanh.f32 %v322_v48 }
 0x1d8   :  { %v323_v51 = vmul.f32 %v321_v50, %v303_v49 }
 0x1da   :  { %731 = vtanh.f32 %v323_v51 }
 0x1dc   :  { %v726_v52 = vpop.eup %725 }
 0x1dd   :  { %v328_v55 = vmul.f32 %v726_v52, %v292_v39 }
 0x1df   :  { %v330_v56 = vsub.f32 2.0, %v328_v55 }
 0x1e0   :  { %v728_v57 = vpop.eup %727 }
 0x1e1   :  { %v329_v58 = vmul.f32 %v728_v57, %v293_v47  ;;  %v332_v61 = vmul.f32 %v726_v52, %v330_v56  ;;  %v730_v62 = vpop.eup %729 }
 0x1e3   :  { %v331_v63 = vsub.f32 2.0, %v329_v58  ;;  %v334_v0 = vmul.f32 %v730_v62, %v332_v61 }
 0x1e4   :  { %v732_v3 = vpop.eup %731 }
 0x1e5   :  { %v333_v1 = vmul.f32 %v728_v57, %v331_v63  ;;  %v338_v2 = vsel %vm336_vm8, %v334_v0, 0.0 }
 0x1e6   :  { %v340_v4 = vmul.f32 %v338_v2, %v338_v2 }
 0x1e7   :  { %v335_v5 = vmul.f32 %v732_v3, %v333_v1 }
 0x1e8   :  { %v342_v6 = vmul.f32 %v340_v4, %v957_v20 }
 0x1e9   :  { %v339_v7 = vsel %vm337_vm9, %v335_v5, 0.0 }
 0x1ea   :  { %v341_v8 = vmul.f32 %v339_v7, %v339_v7  ;;  %733 = vrsqrt.f32 %v342_v6  ;;  %vm346_vm10 = vcmp.eq.f32.partialorder %v342_v6, inf  ;;  %v349_v12 = vand.u32 2147483648, %v342_v6 }
 0x1eb   :  { %vm348_vm11 = vcmp.eq.f32.partialorder %v342_v6, 0.0 }
 0x1ec   :  { %v343_v9 = vmul.f32 %v341_v8, %v960_v21 }
 0x1ee   :  { %735 = vrsqrt.f32 %v343_v9  ;;  %vm353_vm12 = vcmp.eq.f32.partialorder %v343_v9, inf  ;;  %v356_v18 = vand.u32 2147483648, %v343_v9  ;;  %vm355_vm13 = vcmp.eq.f32.partialorder %v343_v9, 0.0 }
 0x1f4   :  { %v734_v10 = vpop.eup %733 }
 0x1f5   :  { %v345_v11 = vmul.f32 %v734_v10, %v342_v6 }
 0x1f7   :  { %v347_v13 = vsel %vm346_vm10, %v342_v6, %v345_v11 }
 0x1f8   :  { %v736_v14 = vpop.eup %735  ;;  %v350_v15 = vsel %vm348_vm11, %v349_v12, %v347_v13 }
 0x1f9   :  { %v352_v16 = vmul.f32 %v736_v14, %v343_v9  ;;  %v358_v17 = vmax.f32 %v350_v15, 1e-15 }
 0x1fb   :  { %v354_v19 = vsel %vm353_vm12, %v343_v9, %v352_v16  ;;  %737 = vrcp.f32 %v358_v17  ;;  %vm360_vm14 = vcmp.gt.f32.partialorder %v358_v17, 0.996 }
 0x1fc   :  { %v357_v22 = vsel %vm355_vm13, %v356_v18, %v354_v19 }
 0x1fd   :  { %v359_v23 = vmax.f32 %v357_v22, 1e-15 }
 0x1ff   :  { %739 = vrcp.f32 %v359_v23  ;;  %vm361_vm15 = vcmp.gt.f32.partialorder %v359_v23, 0.996 }
 0x205   :  { %v738_v24 = vpop.eup %737 }
 0x206   :  { %v364_v25 = vmul.f32 %v738_v24, %v358_v17 }
 0x208   :  { %v366_v26 = vsub.f32 2.0, %v364_v25 }
 0x209   :  { %v740_v27 = vpop.eup %739 }
 0x20a   :  { %v365_v28 = vmul.f32 %v740_v27, %v359_v23  ;;  %v368_v29 = vmul.f32 %v738_v24, %v366_v26 }
 0x20c   :  { %v367_v30 = vsub.f32 2.0, %v365_v28  ;;  %v370_v31 = vmul.f32 0.996, %v368_v29 }
 0x20e   :  { %v369_v32 = vmul.f32 %v740_v27, %v367_v30  ;;  %v372_v33 = vsel %vm360_vm14, %v370_v31, 1.0 }
 0x20f   :  { %v374_v34 = vmul.f32 %v372_v33, %v338_v2 }
 0x210   :  { %v371_v35 = vmul.f32 0.996, %v369_v32 }
 0x211   :  { %v376_v36 = vmul.f32 %v374_v34, %v374_v34  ;;  %v380_v37 = vmul.f32 2.0, %v374_v34 }
 0x212   :  { %v373_v39 = vsel %vm361_vm15, %v371_v35, 1.0 }
 0x213   :  { %v375_v40 = vmul.f32 %v373_v39, %v339_v7  ;;  %v378_v41 = vmul.f32 %v376_v36, %v957_v20  ;;  %v382_v42 = vmul.f32 %v380_v37, %v955_v60 }
 0x215   :  { %v377_v43 = vmul.f32 %v375_v40, %v375_v40  ;;  %v381_v44 = vmul.f32 2.0, %v375_v40  ;;  %v384_v45 = vadd.f32 1.0, %v382_v42  ;;  %v394_v46 = vmul.f32 %v524_v38, %v378_v41 }
 0x216   :  { %v412_v0 = vsub.f32 1.0, %v378_v41 }
 0x217   :  { %v379_v47 = vmul.f32 %v377_v43, %v960_v21  ;;  %v383_v48 = vmul.f32 %v953_v59, %v381_v44  ;;  %v396_v49 = vadd.f32 %v394_v46, %v384_v45  ;;  %v392_v58 = vadd.f32 %v524_v38, %v384_v45 }
 0x219   :  { %v385_v50 = vadd.f32 1.0, %v383_v48  ;;  %v395_v51 = vmul.f32 %v524_v38, %v379_v47  ;;  %v398_v52 = vmax.f32 %v396_v49, 1e-15  ;;  %v408_v4 = vmul.f32 %v392_v58, %v374_v34 }
 0x21a   :  { %v413_v8 = vsub.f32 1.0, %v379_v47 }
 0x21b   :  { %v397_v55 = vadd.f32 %v395_v51, %v385_v50  ;;  %741 = vrcp.f32 %v398_v52  ;;  %v393_v1 = vadd.f32 %v524_v38, %v385_v50 }
 0x21d   :  { %v399_v56 = vmax.f32 %v397_v55, 1e-15  ;;  %v409_v10 = vmul.f32 %v393_v1, %v375_v40  ;;  %v525_v1 = vld [vmem:[%s1014_s3] ss:$0 sm:$0xff] }
 0x21f   :  { %743 = vrcp.f32 %v399_v56 }
 0x225   :  { %v742_v57 = vpop.eup %741 }
 0x226   :  { %v402_v61 = vmul.f32 %v742_v57, %v398_v52 }
 0x228   :  { %v404_v62 = vsub.f32 2.0, %v402_v61 }
 0x229   :  { %v744_v63 = vpop.eup %743 }
 0x22a   :  { %v403_v2 = vmul.f32 %v744_v63, %v399_v56  ;;  %v406_v3 = vmul.f32 %v742_v57, %v404_v62 }
 0x22c   :  { %v405_v5 = vsub.f32 2.0, %v403_v2  ;;  %v410_v6 = vmul.f32 %v408_v4, %v406_v3  ;;  %v981_v7 = vmul.f32 %v412_v0, %v406_v3 }
 0x22e   :  { %v407_v9 = vmul.f32 %v744_v63, %v405_v5  ;;  %v416_v11 = vmul.f32 %v410_v6, %v410_v6  ;;  %v420_v12 = vmul.f32 2.0, %v410_v6  ;;  %v428_v16 = vmul.f32 %v981_v7, %v981_v7 }
 0x230   :  { %v411_v13 = vmul.f32 %v409_v10, %v407_v9  ;;  %v415_v14 = vmul.f32 %v413_v8, %v407_v9  ;;  %v422_v15 = vmul.f32 %v420_v12, %v981_v7  ;;  %v418_v19 = vmul.f32 %v416_v11, %v957_v20 }
 0x231   :  { %v430_v26 = vmul.f32 %v524_v38, %v428_v16 }
 0x232   :  { %v417_v17 = vmul.f32 %v411_v13, %v411_v13  ;;  %v421_v18 = vmul.f32 2.0, %v411_v13  ;;  %v424_v22 = vmul.f32 %v422_v15, %v955_v60  ;;  %v429_v24 = vmul.f32 %v415_v14, %v415_v14 }
 0x234   :  { %v423_v23 = vmul.f32 %v421_v18, %v415_v14  ;;  %v426_v25 = vadd.f32 %v424_v22, %v418_v19  ;;  %v419_v27 = vmul.f32 %v417_v17, %v960_v21  ;;  %v431_v31 = vmul.f32 %v524_v38, %v429_v24 }
 0x236   :  { %v425_v28 = vmul.f32 %v953_v59, %v423_v23  ;;  %v432_v29 = vadd.f32 %v430_v26, %v426_v25 }
 0x238   :  { %v427_v30 = vadd.f32 %v425_v28, %v419_v27  ;;  %v434_v32 = vmax.f32 %v432_v29, 0.0 }
 0x23a   :  { %v433_v33 = vadd.f32 %v431_v31, %v427_v30  ;;  %745 = vrsqrt.f32 %v434_v32  ;;  %vm438_vm0 = vcmp.eq.f32.partialorder %v434_v32, inf  ;;  %v441_v60 = vand.u32 2147483648, %v434_v32 }
 0x23b   :  { %vm440_vm1 = vcmp.eq.f32.partialorder %v434_v32, 0.0 }
 0x23c   :  { %v435_v34 = vmax.f32 %v433_v33, 0.0 }
 0x23e   :  { %747 = vrsqrt.f32 %v435_v34  ;;  %vm445_vm2 = vcmp.eq.f32.partialorder %v435_v34, inf  ;;  %v448_v59 = vand.u32 2147483648, %v435_v34  ;;  %vm447_vm3 = vcmp.eq.f32.partialorder %v435_v34, 0.0 }
 0x244   :  { %v746_v35 = vpop.eup %745 }
 0x245   :  { %v437_v20 = vmul.f32 %v746_v35, %v434_v32 }
 0x247   :  { %v439_v36 = vsel %vm438_vm0, %v434_v32, %v437_v20 }
 0x248   :  { %v748_v37 = vpop.eup %747  ;;  %v442_v39 = vsel %vm440_vm1, %v441_v60, %v439_v36 }
 0x249   :  { %v450_v40 = vmax.f32 %v442_v39, 1e-15  ;;  %v444_v21 = vmul.f32 %v748_v37, %v435_v34 }
 0x24b   :  { %749 = vrcp.f32 %v450_v40  ;;  %v446_v41 = vsel %vm445_vm2, %v435_v34, %v444_v21  ;;  %vm452_vm4 = vcmp.gt.f32.partialorder %v450_v40, 0.996 }
 0x24c   :  { %v449_v38 = vsel %vm447_vm3, %v448_v59, %v446_v41 }
 0x24d   :  { %v451_v42 = vmax.f32 %v449_v38, 1e-15 }
 0x24f   :  { %751 = vrcp.f32 %v451_v42  ;;  %vm453_vm5 = vcmp.gt.f32.partialorder %v451_v42, 0.996 }
 0x255   :  { %v750_v43 = vpop.eup %749 }
 0x256   :  { %v456_v44 = vmul.f32 %v750_v43, %v450_v40 }
 0x258   :  { %v458_v45 = vsub.f32 2.0, %v456_v44 }
 0x259   :  { %v752_v46 = vpop.eup %751 }
 0x25a   :  { %v460_v47 = vmul.f32 %v750_v43, %v458_v45  ;;  %v457_v48 = vmul.f32 %v752_v46, %v451_v42 }
 0x25c   :  { %v462_v49 = vmul.f32 0.996, %v460_v47  ;;  %v459_v50 = vsub.f32 2.0, %v457_v48 }
 0x25e   :  { %v464_v51 = vsel %vm452_vm4, %v462_v49, 1.0  ;;  %v461_v52 = vmul.f32 %v752_v46, %v459_v50 }
 0x25f   :  { %v466_v55 = vmul.f32 %v464_v51, %v410_v6  ;;  %v480_v61 = vmul.f32 %v464_v51, %v981_v7 }
 0x260   :  { %v463_v56 = vmul.f32 0.996, %v461_v52 }
 0x261   :  { %470 = vperm.xlu0 %703, %v466_v55  }
 0x262   :  { %v465_v57 = vsel %vm453_vm5, %v463_v56, 1.0 }
 0x263   :  { %v467_v58 = vmul.f32 %v465_v57, %v411_v13  ;;  %v481_v62 = vmul.f32 %v465_v57, %v415_v14 }
 0x265   :  { %475 = vperm.xlu1 %704, %v467_v58  }
 0x269   :  { %484 = vperm.xlu1 %704, %v480_v61  }
 0x26d   :  { %489 = vperm.xlu1 %704, %v481_v62  }
 0x2e0   :  { %v471_v0 = vpop.permute.xlu0 %470 }
 0x2e1   :  { %v478_v3 = vmul.f32 %v471_v0, %v947_v54 }
 0x2e4   :  { %v476_v63 = vpop.permute.xlu1 %475 }
 0x2e5   :  { %v479_v8 = vmul.f32 %v945_v53, %v476_v63 }
 0x2e8   :  { %v485_v2 = vpop.permute.xlu1 %484 }
 0x2e9   :  { %v498_v4 = vmul.f32 %v525_v1, %v485_v2 }
 0x2eb   :  { %v500_v5 = vadd.f32 %v498_v4, %v478_v3 }
 0x2ec   :  { %v490_v6 = vpop.permute.xlu1 %489 }
 0x2ed   :  { %502 = vst [vmem:[#allocation9] sm:$0xff] %v500_v5  ;;  %v499_v7 = vmul.f32 %v525_v1, %v490_v6 }
 0x2ef   :  { %v501_v9 = vadd.f32 %v499_v7, %v479_v8 }
 0x2f1   :  { %503 = vst [vmem:[#allocation9 + $0x8] sm:$0xff] %v501_v9 }
 0x2f2   :  { %830 = shalt.err (!%p827_p0)
}
 0x2f3   :  { %s831_s11 = scalar_lea.hbm %s1016_s5, 256 }
 0x2f4   :  { %p832_p1 = scmp.ne.s32.totalorder %s1016_s5, %s831_s11  ;;  %p835_p2 = scmp.lt.u32.totalorder %s831_s11, %s1016_s5 }
 0x2f6   :  { %p837_p3 = pnand %p835_p2, %p832_p1 }
 0x2f8   :  { %840 = shalt.err (!%p837_p3)
}
 0x2f9   :  { %515 = dma.vmem_to_hbm [thread:$0]  %s510_s8, 256, %s1016_s5, [#allocation5], %s849_s6, %s849_s6, %s850_s7  }
 0x2fa   :  { %845 = dma.done.wait [#allocation5], 256  }
 0x2fb   :  { %846 = vsyncadd [#allocation5], 4294967040 }
 0x2fc   :  { %519 = vsyncpa [#allocation4], 1 }
 0x2fd   :  { %520 = vsyncpa [#allocation7], 1 }
 0x2fe   :  { %521 = vsyncpa [#allocation5], 1 }

</bundles_post_ra>
